<compile_context>
chip_gen: v6e
topology: v6e:2x2x1
jax: 0.10.0
libtpu: 0.0.40
codegen_flags: <defaults>
</compile_context>

<pallas_src>
import functools

import jax
import jax.numpy as jnp
from jax.experimental import pallas as pl
from jax.experimental.pallas import tpu as pltpu


# ----------------------------------------------------------------------------
# Kernels
# ----------------------------------------------------------------------------

def _se_fused_kernel(x_ref, w1t_ref, w2t_ref, o_ref):
    """Single-pass SE: pool + MLP + scale on one (Bt, C, HW) block.

    x_ref / o_ref: (Bt, C, HW)   w1t_ref: (C, Cr)   w2t_ref: (Cr, C)
    """
    hw = x_ref.shape[-1]

    # Squeeze: global average pool over the spatial (lane) axis with an f32
    # accumulator; dtype=... avoids materializing a full f32 copy of the tile
    # for low-precision inputs.
    pooled = jnp.sum(x_ref[...], axis=-1, dtype=jnp.float32) * (1.0 / hw)   # (Bt, C)

    # Excitation MLP.  Weights arrive pre-transposed from the wrapper, so both
    # matmuls contract on the last axis with no in-kernel transpose.
    h = jnp.maximum(
        jnp.dot(pooled, w1t_ref[...], preferred_element_type=jnp.float32), 0.0
    )                                                                        # (Bt, Cr)
    s = jax.nn.sigmoid(
        jnp.dot(h, w2t_ref[...], preferred_element_type=jnp.float32)
    )                                                                        # (Bt, C)

    # Scale: re-read x from VMEM (cheap) and apply the per-(image, channel)
    # gate broadcast over lanes.  Gate is cast once; the full-tile path is a
    # single multiply in the input dtype.
    gate = s.astype(x_ref.dtype)[:, :, None]                                 # (Bt, C, 1)
    o_ref[...] = (x_ref[...] * gate).astype(o_ref.dtype)


def _pool_kernel(x_ref, sum_ref):
    """Two-pass fallback, pass 1: accumulate the spatial sum per (image, C).

    x_ref: (1, C, hw_t)   sum_ref: (1, 1, C) float32, resident across hw axis.
    """
    @pl.when(pl.program_id(1) == 0)
    def _():
        sum_ref[...] = jnp.zeros_like(sum_ref)

    part = jnp.sum(x_ref[...], axis=-1, dtype=jnp.float32)   # (1, C)
    sum_ref[...] += part[:, None, :]


def _scale_kernel(x_ref, gate_ref, o_ref):
    """Two-pass fallback, pass 2: per-channel broadcast scale of an HW tile.

    x_ref / o_ref: (1, C, hw_t)   gate_ref: (1, C, 1) in x dtype.
    """
    o_ref[...] = (x_ref[...] * gate_ref[...]).astype(o_ref.dtype)


# ----------------------------------------------------------------------------
# Per-chip configuration
# ----------------------------------------------------------------------------

@functools.lru_cache(maxsize=1)
def _pipelined_vmem_budget():
    """Bytes of VMEM we allow the pipelined buffers to occupy (per chip)."""
    phys = 64 << 20  # conservative default: v7x per-TensorCore physical VMEM
    try:
        info = pltpu.get_tpu_info()
        for attr in ("vmem_capacity_bytes", "vmem_size_bytes", "vmem_bytes"):
            v = getattr(info, attr, None)
            if v:
                phys = int(v)
                break
    except Exception:
        pass
    # Leave ~1/4 of physical VMEM as compiler scratch / spill headroom, and
    # never budget more than 96 MiB of pipelined buffers even on 128-MiB chips.
    return min((phys * 3) // 4, 96 << 20)


def _pick_batch_tile(batch, per_image_bytes, target_bytes):
    """Largest divisor of `batch` whose block is <= target_bytes, preferring an
    even number of grid steps (v7x megacore sharding across 2 TensorCores)."""
    bt = int(max(1, min(batch, target_bytes // max(per_image_bytes, 1))))
    while batch % bt:
        bt -= 1

    def steps(b):
        return batch // b

    # Prefer an even step count >= 2 when the batch allows it.
    cand = bt
    while cand > 1 and not (steps(cand) >= 2 and steps(cand) % 2 == 0):
        cand -= 1
        while batch % cand:
            cand -= 1
    if steps(cand) >= 2 and steps(cand) % 2 == 0:
        return cand

    # Otherwise fall back to "at least 2 steps" when possible.
    while bt > 1 and steps(bt) < 2:
        bt -= 1
        while batch % bt:
            bt -= 1
    return bt


def _pick_hw_tile(hw, c, itemsize, budget_bytes):
    """Largest multiple-of-128 divisor of hw whose (C, hw_t) block fits the
    per-block budget, or None if no such divisor exists."""
    max_block = max(budget_bytes // 5, 1)
    max_t = max_block // max(c * itemsize, 1)
    k_max = min(hw, max_t) // 128
    for k in range(k_max, 0, -1):
        t = 128 * k
        if hw % t == 0:
            return t
    return None


# ----------------------------------------------------------------------------
# Wrappers
# ----------------------------------------------------------------------------

def _se_pure_jax(x, w1, w2):
    """Pure-JAX reference / last-resort fallback mirroring the PyTorch forward."""
    y = jnp.mean(x, axis=(2, 3))                 # (B, C)
    y = jnp.maximum(y @ w1.T, 0.0)               # (B, C//r)
    y = jax.nn.sigmoid(y @ w2.T)                 # (B, C)
    return x * y[:, :, None, None]


def _se_two_pass(x_flat, w1t, w2t, hw_t, donate_x):
    """Fallback for images too large for a fused single-image block:
    Pallas pool kernel -> tiny XLA MLP -> Pallas scale kernel (HW-tiled)."""
    B, C, HW = x_flat.shape
    itemsize = jnp.dtype(x_flat.dtype).itemsize
    n_hw = HW // hw_t
    blk_bytes = C * hw_t * itemsize

    pool_limit = int(max(2 * blk_bytes + C * 4 + (2 << 20), 16 << 20))
    pooled_sum = pl.pallas_call(
        _pool_kernel,
        out_shape=jax.ShapeDtypeStruct((B, 1, C), jnp.float32),
        grid_spec=pltpu.PrefetchScalarGridSpec(
            num_scalar_prefetch=0,
            grid=(B, n_hw),
            in_specs=[pl.BlockSpec((1, C, hw_t), lambda b, h: (b, 0, h))],
            out_specs=pl.BlockSpec((1, 1, C), lambda b, h: (b, 0, 0)),
        ),
        compiler_params=pltpu.CompilerParams(
            dimension_semantics=("parallel", "arbitrary"),
            vmem_limit_bytes=pool_limit,
        ),
    )(x_flat)

    # The excitation MLP is tiny (B x C); plain XLA is fine here.
    pooled = pooled_sum.reshape(B, C) * (1.0 / HW)
    h = jnp.maximum(jnp.dot(pooled, w1t, preferred_element_type=jnp.float32), 0.0)
    gate = jax.nn.sigmoid(jnp.dot(h, w2t, preferred_element_type=jnp.float32))
    gate = gate.astype(x_flat.dtype).reshape(B, C, 1)

    scale_limit = int(max(4 * blk_bytes + 2 * C * itemsize + (2 << 20), 16 << 20))
    out_flat = pl.pallas_call(
        _scale_kernel,
        out_shape=jax.ShapeDtypeStruct((B, C, HW), x_flat.dtype),
        grid_spec=pltpu.PrefetchScalarGridSpec(
            num_scalar_prefetch=0,
            grid=(B, n_hw),
            in_specs=[
                pl.BlockSpec((1, C, hw_t), lambda b, h: (b, 0, h)),
                pl.BlockSpec((1, C, 1), lambda b, h: (b, 0, 0)),
            ],
            out_specs=pl.BlockSpec((1, C, hw_t), lambda b, h: (b, 0, h)),
        ),
        compiler_params=pltpu.CompilerParams(
            dimension_semantics=("parallel", "parallel"),
            vmem_limit_bytes=scale_limit,
        ),
        input_output_aliases=({0: 0} if donate_x else {}),
    )(x_flat, gate)
    return out_flat


@functools.partial(
    jax.jit,
    static_argnames=("donate_x", "force_two_pass", "vmem_budget_override"),
)
def se_layer(x_nchw, w1, w2, *, donate_x=False, force_two_pass=False,
             vmem_budget_override=None):
    """SE layer forward.

    x_nchw: (B, C, H, W); w1: (C//r, C); w2: (C, C//r)  (nn.Linear (out, in))."""
    B, C, H, W = x_nchw.shape
    HW = H * W
    Cr = w1.shape[0]

    x_flat = x_nchw.reshape(B, C, HW)
    # Hoist the weight transposes out of the kernel (loop-invariant).
    w1t = w1.T  # (C, Cr)
    w2t = w2.T  # (Cr, C)

    itemsize = jnp.dtype(x_nchw.dtype).itemsize
    budget_cap = (vmem_budget_override if vmem_budget_override is not None
                  else _pipelined_vmem_budget())
    # Per-block target: up to ~8 MiB, but never more than ~1/5 of the budget
    # (2x double-buffered in + out = 4x block, plus weights and headroom).
    target_block = max(min(8 << 20, budget_cap // 5), 1)

    per_image_bytes = C * HW * itemsize
    bt = _pick_batch_tile(B, per_image_bytes, target_block)
    block_bytes = bt * per_image_bytes
    w_bytes = 2 * C * Cr * jnp.dtype(w1.dtype).itemsize
    needed = 4 * block_bytes + 2 * w_bytes + (2 << 20)

    if force_two_pass or needed > budget_cap:
        # A single image's slab does not fit the double-buffered VMEM budget
        # (e.g. early-stage SE with large H*W on v7x): tile over the spatial
        # axis with a pool pass and a scale pass instead.
        hw_t = _pick_hw_tile(HW, C, itemsize, budget_cap)
        if hw_t is None:
            # TODO(synk): no multiple-of-128 divisor of H*W fits the budget;
            # would need HW padding or a channels-tiled variant. Use plain XLA.
            return _se_pure_jax(x_nchw, w1, w2)
        out_flat = _se_two_pass(x_flat, w1t, w2t, hw_t, donate_x)
        return out_flat.reshape(B, C, H, W)

    # Fused single-pass path.  vmem_limit is sized from the actual need with a
    # 16 MiB floor (v5e's scoped default is only 16 MiB, so be explicit).
    vmem_limit = int(max(needed, 16 << 20))

    out_flat = pl.pallas_call(
        _se_fused_kernel,
        out_shape=jax.ShapeDtypeStruct((B, C, HW), x_nchw.dtype),
        grid_spec=pltpu.PrefetchScalarGridSpec(
            num_scalar_prefetch=0,
            grid=(B // bt,),
            in_specs=[
                pl.BlockSpec((bt, C, HW), lambda b: (b, 0, 0)),
                # Weights: full arrays, constant index_map (loop-invariant,
                # a few KB; no benefit from extra buffering).
                pl.BlockSpec((C, Cr), lambda b: (0, 0)),
                pl.BlockSpec((Cr, C), lambda b: (0, 0)),
            ],
            out_specs=pl.BlockSpec((bt, C, HW), lambda b: (b, 0, 0)),
        ),
        compiler_params=pltpu.CompilerParams(
            dimension_semantics=("parallel",),
            vmem_limit_bytes=vmem_limit,
        ),
        input_output_aliases=({0: 0} if donate_x else {}),
    )(x_flat, w1t, w2t)

    return out_flat.reshape(B, C, H, W)


# ----------------------------------------------------------------------------
# Self-test
# ----------------------------------------------------------------------------

if __name__ == "__main__":
    # Small shapes consistent with the module: channel=64, reduction=16.
    B, C, H, W = 2, 64, 16, 16
    reduction = 16
    Cr = C // reduction

    key = jax.random.PRNGKey(0)
    kx, k1, k2 = jax.random.split(key, 3)

    x = jax.random.normal(kx, (B, C, H, W), dtype=jnp.float32)
    # Deterministic synthetic weights (nn.Linear shape convention: (out, in)).
    w1 = jax.random.normal(k1, (Cr, C), dtype=jnp.float32) * (1.0 / jnp.sqrt(C))
    w2 = jax.random.normal(k2, (C, Cr), dtype=jnp.float32) * (1.0 / jnp.sqrt(Cr))

    ref = _se_pure_jax(x, w1, w2)

    # Main fused single-pass path.
    out = jax.block_until_ready(se_layer(x, w1, w2))
    assert out.shape == (B, C, H, W)
    assert jnp.allclose(out, ref, atol=1e-5, rtol=1e-5), "fused path mismatch"

    # Two-pass (pool + scale) fallback, forced with a small budget so the HW
    # axis actually tiles (exercises the big-image / v7x guard path).
    out2 = jax.block_until_ready(
        se_layer(x, w1, w2, force_two_pass=True, vmem_budget_override=256 * 1024)
    )
    assert jnp.allclose(out2, ref, atol=1e-5, rtol=1e-5), "two-pass path mismatch"

    print("KERNEL_OK")
</pallas_src>

<mosaic_0001>
module attributes {stable_mosaic.version = 11 : i64} {
  func.func @_se_fused_kernel(%arg0: i32, %arg1: memref<1x64x256xf32, #tpu.memory_space<vmem>>, %arg2: memref<64x4xf32, #tpu.memory_space<vmem>>, %arg3: memref<4x64xf32, #tpu.memory_space<vmem>>, %arg4: memref<1x64x256xf32, #tpu.memory_space<vmem>>) attributes {dimension_semantics = [#tpu.dimension_semantics<parallel>], iteration_bounds = array<i64: 2>, scalar_prefetch = 0 : i64, scratch_operands = 0 : i64, tpu.core_type = #tpu.core_type<tc>, window_params = [{transform_indices = @transform_0, window_bounds = array<i64: 1, 64, 256>}, {pipeline_mode = #tpu.pipeline_mode<synchronous>, transform_indices = @transform_1, window_bounds = array<i64: 64, 4>}, {pipeline_mode = #tpu.pipeline_mode<synchronous>, transform_indices = @transform_2, window_bounds = array<i64: 4, 64>}, {transform_indices = @transform_3, window_bounds = array<i64: 1, 64, 256>}]} {
    %c0 = arith.constant 0 : index
    %c0_0 = arith.constant 0 : index
    %c0_1 = arith.constant 0 : index
    %0 = vector.load %arg1[%c0, %c0_0, %c0_1] : memref<1x64x256xf32, #tpu.memory_space<vmem>>, vector<1x64x256xf32>
    %cst = arith.constant dense<0.000000e+00> : vector<1x64xf32>
    %1 = vector.multi_reduction <add>, %0, %cst [2] : vector<1x64x256xf32> to vector<1x64xf32>
    %cst_2 = arith.constant 3.906250e-03 : f32
    %2 = vector.broadcast %cst_2 : f32 to vector<1x64xf32>
    %3 = arith.mulf %1, %2 : vector<1x64xf32>
    %c0_3 = arith.constant 0 : index
    %c0_4 = arith.constant 0 : index
    %4 = vector.load %arg2[%c0_3, %c0_4] : memref<64x4xf32, #tpu.memory_space<vmem>>, vector<64x4xf32>
    %cst_5 = arith.constant dense<0.000000e+00> : vector<1x4xf32>
    %5 = tpu.matmul %3, %4, %cst_5 {dimension_numbers = #tpu.dot_dimension_numbers<[1], [0], [0], [1], [0, 0, 1, 1], [], []>} : vector<1x64xf32>, vector<64x4xf32>, vector<1x4xf32> -> vector<1x4xf32>
    %cst_6 = arith.constant 0.000000e+00 : f32
    %6 = vector.broadcast %cst_6 : f32 to vector<1x4xf32>
    %7 = arith.maximumf %5, %6 : vector<1x4xf32>
    %c0_7 = arith.constant 0 : index
    %c0_8 = arith.constant 0 : index
    %8 = vector.load %arg3[%c0_7, %c0_8] : memref<4x64xf32, #tpu.memory_space<vmem>>, vector<4x64xf32>
    %cst_9 = arith.constant dense<0.000000e+00> : vector<1x64xf32>
    %9 = tpu.matmul %7, %8, %cst_9 {dimension_numbers = #tpu.dot_dimension_numbers<[1], [0], [0], [1], [0, 0, 1, 1], [], []>} : vector<1x4xf32>, vector<4x64xf32>, vector<1x64xf32> -> vector<1x64xf32>
    %10 = arith.negf %9 : vector<1x64xf32>
    %11 = math.exp %10 : vector<1x64xf32>
    %cst_10 = arith.constant 1.000000e+00 : f32
    %12 = vector.broadcast %cst_10 : f32 to vector<1x64xf32>
    %13 = arith.addf %12, %11 : vector<1x64xf32>
    %14 = arith.divf %12, %13 : vector<1x64xf32>
    %15 = vector.shape_cast %14 : vector<1x64xf32> to vector<1x64x1xf32>
    %c0_11 = arith.constant 0 : index
    %c0_12 = arith.constant 0 : index
    %c0_13 = arith.constant 0 : index
    %16 = vector.load %arg1[%c0_11, %c0_12, %c0_13] : memref<1x64x256xf32, #tpu.memory_space<vmem>>, vector<1x64x256xf32>
    %17 = vector.broadcast %15 : vector<1x64x1xf32> to vector<1x64x256xf32>
    %18 = arith.mulf %16, %17 : vector<1x64x256xf32>
    %c0_14 = arith.constant 0 : index
    %c0_15 = arith.constant 0 : index
    %c0_16 = arith.constant 0 : index
    %19 = vector.load %arg4[%c0_14, %c0_15, %c0_16] : memref<1x64x256xf32, #tpu.memory_space<vmem>>, vector<1x64x256xf32>
    tpu.vector_store %arg4[%c0_14, %c0_15, %c0_16], %18 {strides = array<i32>} : memref<1x64x256xf32, #tpu.memory_space<vmem>>, vector<1x64x256xf32>,
    return
  }
  func.func @transform_0(%arg0: i32) -> (i32, i32, i32) {
    %c0_i32 = arith.constant 0 : i32
    %c0_i32_0 = arith.constant 0 : i32
    %c0_i32_1 = arith.constant 0 : i32
    return %arg0, %c0_i32, %c0_i32_0 : i32, i32, i32
  }
  func.func @transform_1(%arg0: i32) -> (i32, i32) {
    %c0_i32 = arith.constant 0 : i32
    %c0_i32_0 = arith.constant 0 : i32
    %c0_i32_1 = arith.constant 0 : i32
    return %c0_i32, %c0_i32_0 : i32, i32
  }
  func.func @transform_2(%arg0: i32) -> (i32, i32) {
    %c0_i32 = arith.constant 0 : i32
    %c0_i32_0 = arith.constant 0 : i32
    %c0_i32_1 = arith.constant 0 : i32
    return %c0_i32, %c0_i32_0 : i32, i32
  }
  func.func @transform_3(%arg0: i32) -> (i32, i32, i32) {
    %c0_i32 = arith.constant 0 : i32
    %c0_i32_0 = arith.constant 0 : i32
    %c0_i32_1 = arith.constant 0 : i32
    return %arg0, %c0_i32, %c0_i32_0 : i32, i32, i32
  }
}

</mosaic_0001>

<bundles_post_ra>
// kernel: se_layer.1
= control target key start
LH: loop header
LB: loop body
LE: loop exit
PB: predicated region body
PF: predicated region fallthrough
CT: control target
= control target key end

     0   :  { %s667_s12 = smov 0   ;;  %s812_s0 = inlined_call_operand.vmem [shape: f32[2,64,256], index: 0, kind: input, shape index: {}]   ;;  %s813_s1 = inlined_call_operand.vmem [shape: f32[64,4], index: 1, kind: input, shape index: {}]   ;;  %s814_s2 = inlined_call_operand.vmem [shape: f32[4,64], index: 2, kind: input, shape index: {}]   ;;  %s815_s3 = inlined_call_operand.vmem [shape: f32[2,64,256], index: 3, kind: output, shape index: {}]  }
   0x1 LB: > { %s571_s13 = sadd.s32 4294967295, %s643_s12   ;;  %p575_p0 = scmp.ge.s32.totalorder %s643_s12, 1  ;;  %s643_s12 = sphi %s667_s12, %s13_s12  }
   0x2   : > { %p137_p1 = scmp.lt.s32.totalorder %s643_s12, 3 }
   0x4   : > { %p138_p2 = pnand %p575_p0, %p137_p1 }
   0x5   : > { %p161_p3 = scmp.lt.s32.totalorder (!%p138_p2), %s571_s13, 1 }
   0x6   : > { %141 = sbr.rel (%p138_p2) target bundleno = 729 (0x2d9), region = 32 }
   0xb   : > { %s817_s13 = smov (!%p161_p3, %s571_s13), 1  ;;  %v645_v24 = vmov 0.0   ;;  %v226_v25 = vld [vmem:[%s813_s1 + $0x38] sm:$0xff]  ;;  %v225_v26 = vld [vmem:[%s813_s1 + $0x30] sm:$0xff]  ;;  %v224_v27 = vld [vmem:[%s813_s1 + $0x28] sm:$0xff]  ;;  %vm646_vm0 = vmmov 0   ;;  %v235_v33 = vlaneseq }
   0xc   : > { %s586_s14 = sshll.u32 %s817_s13, 7  ;;  %599 = vmatprep.subr.mxu0 %v645_v24  ;;  %618 = vmatprep.subr.mxu1 %v645_v24  ;;  %v223_v28 = vld [vmem:[%s813_s1 + $0x20] sm:$0xff]  ;;  %v222_v29 = vld [vmem:[%s813_s1 + $0x18] sm:$0xff]  ;;  %v221_v30 = vld [vmem:[%s813_s1 + $0x10] sm:$0xff]  ;;  %vm246_vm1 = vcmask 130112   ;;  %vm253_vm2 = vcmask 195712  }
   0xd   : > { %s165_s17 = scalar_lea.vmem %s812_s0, %s586_s14  ;;  %600 = vmatpush3.msra.mxu0 %v226_v25  ;;  %v220_v31 = vld [vmem:[%s813_s1 + $0x8] sm:$0xff]  ;;  %v219_v32 = vld [vmem:[%s813_s1] sm:$0xff]  ;;  %615 = vmatprep.mubr.msk.f32.mxu0 %vm646_vm0, %v645_v24  ;;  %v236_v34 = vand.u32 127, %v235_v33  ;;  %v755_v35 = vshrl.u32 %v235_v33, 7  ;;  %vm260_vm3 = vcmask 261312   ;;  %vm267_vm4 = vcmask 326912   ;;  %s775_s11 = scalar_lea.vmem %s815_s3, %s586_s14 }
   0xe   : > { %v683_v0 = vld [vmem:[%s165_s17] sm:$0xff]  ;;  %v685_v1 = vld [vmem:[%s165_s17 + $0x8] sm:$0xff]  ;;  %v693_v5 = vld [vmem:[%s165_s17 + $0x10] sm:$0xff]  ;;  %601 = vmatprep.subr.mxu0 %v645_v24  ;;  %620 = vmatprep.mubr.msk.f32.mxu1 %vm646_vm0, %v645_v24  ;;  %vm274_vm5 = vcmask 392512   ;;  %vm281_vm6 = vcmask 458112   ;;  %vm288_vm7 = vcmask 523712  }
   0xf   : > { %v687_v2 = vld [vmem:[%s165_s17 + $0x20] sm:$0xff]  ;;  %v187_v3 = vadd.f32 %v685_v1, %v683_v0  ;;  %v691_v4 = vld [vmem:[%s165_s17 + $0x28] sm:$0xff]  ;;  %v695_v6 = vld [vmem:[%s165_s17 + $0x18] sm:$0xff]  ;;  %602 = vmatpush3.msra.mxu0 %v225_v26  ;;  %v241_v36 = vadd.s32 4294967288, %v236_v34  ;;  %v248_v38 = vadd.s32 4294967280, %v236_v34  ;;  %v255_v39 = vadd.s32 4294967272, %v236_v34 }
  0x10   : > { %v193_v7 = vadd.f32 %v691_v4, %v687_v2  ;;  %v699_v8 = vld [vmem:[%s165_s17 + $0x30] sm:$0xff]  ;;  %v701_v9 = vld [vmem:[%s165_s17 + $0x38] sm:$0xff]  ;;  %v190_v10 = vadd.f32 %v695_v6, %v693_v5  ;;  %v707_v12 = vld [vmem:[%s165_s17 + $0x40] sm:$0xff]  ;;  %603 = vmatprep.subr.mxu0 %v645_v24  ;;  %v239_v41 = vsub.s32 %v236_v34, %v755_v35  ;;  %v262_v44 = vadd.s32 4294967264, %v236_v34 }
  0x11   : > { %188 = vadd.xlane.f32.xlu0 %v187_v3  ;;  %v196_v11 = vadd.f32 %v701_v9, %v699_v8  ;;  %v709_v13 = vld [vmem:[%s165_s17 + $0x48] sm:$0xff]  ;;  %v711_v14 = vld [vmem:[%s165_s17 + $0x50] sm:$0xff]  ;;  %v713_v15 = vld [vmem:[%s165_s17 + $0x58] sm:$0xff]  ;;  %604 = vmatpush3.msra.mxu0 %v224_v27  ;;  %v244_v43 = vsub.s32 %v241_v36, %v755_v35  ;;  %v251_v45 = vsub.s32 %v248_v38, %v755_v35  ;;  %v269_v49 = vadd.s32 4294967256, %v236_v34 }
  0x12   : > { %194 = vadd.xlane.f32.xlu1 %v193_v7  ;;  %v199_v16 = vadd.f32 %v709_v13, %v707_v12  ;;  %v202_v17 = vadd.f32 %v713_v15, %v711_v14  ;;  %v719_v18 = vld [vmem:[%s165_s17 + $0x60] sm:$0xff]  ;;  %v721_v19 = vld [vmem:[%s165_s17 + $0x68] sm:$0xff]  ;;  %v723_v20 = vld [vmem:[%s165_s17 + $0x70] sm:$0xff]  ;;  %605 = vmatprep.subr.mxu0 %v645_v24  ;;  %v258_v48 = vsub.s32 %v255_v39, %v755_v35  ;;  %v276_v56 = vadd.s32 4294967248, %v236_v34 }
  0x13   : > { %v725_v21 = vld [vmem:[%s165_s17 + $0x78] sm:$0xff]  ;;  %v205_v22 = vadd.f32 %v721_v19, %v719_v18  ;;  %606 = vmatpush3.msra.mxu0 %v223_v28  ;;  %v265_v55 = vsub.s32 %v262_v44, %v755_v35  ;;  %v272_v60 = vsub.s32 %v269_v49, %v755_v35  ;;  %v283_v61 = vadd.s32 4294967240, %v236_v34  ;;  %v364_v34 = vld [vmem:[%s814_s2] sm:$0xf] }
  0x14   : > { %v208_v23 = vadd.f32 %v725_v21, %v723_v20  ;;  %607 = vmatprep.subr.mxu0 %v645_v24  ;;  %vm290_vm8 = vcmask 523264   ;;  %vm369_vm9 = vcmask 1043456   ;;  %vm365_vm10 = vcmask 31744  }
  0x15   : > { %191 = vadd.xlane.f32.xlu0 %v190_v10  ;;  %608 = vmatpush3.msra.mxu0 %v222_v29  ;;  %v451_v44 = vsub.s32 0, %v755_v35 }
  0x16   : > { %197 = vadd.xlane.f32.xlu1 %v196_v11  ;;  %609 = vmatprep.subr.mxu0 %v645_v24 }
  0x17   : > { %610 = vmatpush3.msra.mxu0 %v221_v30  ;;  %619 = vmatpush3.msk.msra.mxu1 %vm369_vm9, %v364_v34 }
  0x18   : > { %611 = vmatprep.subr.mxu0 %v645_v24 }
  0x19   : > { %200 = vadd.xlane.f32.xlu0 %v199_v16  ;;  %612 = vmatpush3.msra.mxu0 %v220_v31 }
  0x1a   : > { %203 = vadd.xlane.f32.xlu1 %v202_v17  ;;  %613 = vmatprep.subr.mxu0 %v645_v24  ;;  %v279_v17 = vsub.s32 %v276_v56, %v755_v35  ;;  %v286_v24 = vsub.s32 %v283_v61, %v755_v35 }
  0x1b   : > { %614 = vmatpush3.msra.mxu0 %v219_v32 }
  0x1d   : > { %206 = vadd.xlane.f32.xlu0 %v205_v22 }
  0x1e   : > { %209 = vadd.xlane.f32.xlu1 %v208_v23 }
  0x9a   : > { %v189_v37 = vpop.xlane.xlu0 %188 }
  0x9b   : > { %v195_v40 = vpop.xlane.xlu1 %194  ;;  %v211_v42 = vmul.f32 0.00390625, %v189_v37 }
  0x9c   : > { %v213_v46 = vmul.f32 0.00390625, %v195_v40 }
  0x9d   : > { %v240_v53 = vrot.slane %v211_v42, %v239_v41 }
  0x9e   : > { %v192_v47 = vpop.xlane.xlu0 %191  ;;  %v252_v57 = vrot.slane %v213_v46, %v251_v45 }
  0x9f   : > { %v212_v50 = vmul.f32 0.00390625, %v192_v47  ;;  %v198_v51 = vpop.xlane.xlu1 %197 }
  0xa0   : > { %v214_v52 = vmul.f32 0.00390625, %v198_v51 }
  0xa1   : > { %v245_v54 = vrot.slane %v212_v50, %v244_v43 }
  0xa2   : > { %v259_v58 = vrot.slane %v214_v52, %v258_v48  ;;  %v201_v59 = vpop.xlane.xlu0 %200 }
  0xa3   : > { %v247_v62 = vsel %vm246_vm1, %v245_v54, %v240_v53  ;;  %v215_v63 = vmul.f32 0.00390625, %v201_v59  ;;  %v204_v3 = vpop.xlane.xlu1 %203 }
  0xa4   : > { %v254_v7 = vsel %vm253_vm2, %v252_v57, %v247_v62  ;;  %v216_v10 = vmul.f32 0.00390625, %v204_v3 }
  0xa5   : > { %v261_v11 = vsel %vm260_vm3, %v259_v58, %v254_v7  ;;  %v266_v16 = vrot.slane %v215_v63, %v265_v55 }
  0xa6   : > { %v273_v22 = vrot.slane %v216_v10, %v272_v60  ;;  %v207_v23 = vpop.xlane.xlu0 %206 }
  0xa7   : > { %v268_v25 = vsel %vm267_vm4, %v266_v16, %v261_v11  ;;  %v217_v26 = vmul.f32 0.00390625, %v207_v23  ;;  %v210_v27 = vpop.xlane.xlu1 %209 }
  0xa8   : > { %v218_v28 = vmul.f32 0.00390625, %v210_v27  ;;  %v275_v30 = vsel %vm274_vm5, %v273_v22, %v268_v25 }
  0xa9   : > { %v280_v29 = vrot.slane %v217_v26, %v279_v17 }
  0xaa   : > { %v287_v31 = vrot.slane %v218_v28, %v286_v24 }
  0xab   : > { %v282_v32 = vsel %vm281_vm6, %v280_v29, %v275_v30 }
  0xac   : > { %v289_v33 = vsel %vm288_vm7, %v287_v31, %v282_v32 }
  0xad   : > { %616 = vmatmul.mubr.msk.f32.vlgmr.msra.gmra.mxu0 %vm290_vm8, %v289_v33 }
 0x16d   : > { %v359_v36 = vpop.f32.mrf.mxu0 }
 0x16e   : > { %v363_v37 = vmax.f32 %v359_v36, 0.0 }
 0x16f   : > { %v617_v38 = vpop.f32.mrf.mxu0 }
 0x170   : > { %621 = vmatmul.mubr.msk.f32.vlgmr.msra.gmra.mxu1 %vm365_vm10, %v363_v37 }
 0x230   : > { %v439_v39 = vpop.f32.mrf.mxu1 }
 0x231   : > { %v583_v40 = vmul.f32 -1.442695, %v439_v39 }
 0x232   : > { %v622_v41 = vpop.f32.mrf.mxu1 }
 0x233   : > { %633 = vpow2.f32 %v583_v40 }
 0x240   : > { %v634_v42 = vpop.eup %633 }
 0x241   : > { %v446_v43 = vadd.f32 1.0, %v634_v42 }
 0x243   : > { %635 = vrcp.f32 %v446_v43 }
 0x250   : > { %v636_v45 = vpop.eup %635 }
 0x251   : > { %v452_v46 = vrot.slane %v636_v45, %v451_v44 }
 0x253   : > { %458 = vbcast.lane.b32.xlu1 %v452_v46, 264  ;;  %454 = vbcast.lane.b32.xlu0 %v452_v46, 256 }
 0x257   : > { %462 = vbcast.lane.b32.xlu1 %v452_v46, 272  ;;  %470 = vbcast.lane.b32.xlu0 %v452_v46, 288 }
 0x25b   : > { %466 = vbcast.lane.b32.xlu1 %v452_v46, 280  ;;  %478 = vbcast.lane.b32.xlu0 %v452_v46, 304 }
 0x25f   : > { %474 = vbcast.lane.b32.xlu1 %v452_v46, 296 }
 0x263   : > { %482 = vbcast.lane.b32.xlu1 %v452_v46, 312 }
 0x2c5   : > { %v459_v35 = vpop.permute.xlu1 %458  ;;  %v455_v47 = vpop.permute.xlu0 %454 }
 0x2c6   : > { %v486_v48 = vmul.f32 %v459_v35, %v693_v5  ;;  %v487_v49 = vmul.f32 %v459_v35, %v695_v6  ;;  %v484_v50 = vmul.f32 %v455_v47, %v683_v0  ;;  %v485_v51 = vmul.f32 %v455_v47, %v685_v1 }
 0x2c8   : > { %502 = vst [vmem:[%s775_s11 + $0x10] sm:$0xff] %v486_v48  ;;  %503 = vst [vmem:[%s775_s11 + $0x18] sm:$0xff] %v487_v49 }
 0x2c9   : > { %500 = vst [vmem:[%s775_s11] sm:$0xff] %v484_v50  ;;  %501 = vst [vmem:[%s775_s11 + $0x8] sm:$0xff] %v485_v51  ;;  %v463_v52 = vpop.permute.xlu1 %462  ;;  %v471_v53 = vpop.permute.xlu0 %470 }
 0x2ca   : > { %v488_v54 = vmul.f32 %v463_v52, %v687_v2  ;;  %v489_v5 = vmul.f32 %v463_v52, %v691_v4  ;;  %v492_v6 = vmul.f32 %v471_v53, %v707_v12  ;;  %v493_v0 = vmul.f32 %v471_v53, %v709_v13 }
 0x2cc   : > { %504 = vst [vmem:[%s775_s11 + $0x20] sm:$0xff] %v488_v54  ;;  %505 = vst [vmem:[%s775_s11 + $0x28] sm:$0xff] %v489_v5 }
 0x2cd   : > { %508 = vst [vmem:[%s775_s11 + $0x40] sm:$0xff] %v492_v6  ;;  %509 = vst [vmem:[%s775_s11 + $0x48] sm:$0xff] %v493_v0  ;;  %v467_v1 = vpop.permute.xlu1 %466  ;;  %v479_v55 = vpop.permute.xlu0 %478 }
 0x2ce   : > { %v490_v56 = vmul.f32 %v467_v1, %v699_v8  ;;  %v491_v2 = vmul.f32 %v467_v1, %v701_v9  ;;  %v496_v4 = vmul.f32 %v479_v55, %v719_v18  ;;  %v497_v12 = vmul.f32 %v479_v55, %v721_v19 }
 0x2d0   : > { %506 = vst [vmem:[%s775_s11 + $0x30] sm:$0xff] %v490_v56  ;;  %507 = vst [vmem:[%s775_s11 + $0x38] sm:$0xff] %v491_v2 }
 0x2d1   : > { %512 = vst [vmem:[%s775_s11 + $0x60] sm:$0xff] %v496_v4  ;;  %513 = vst [vmem:[%s775_s11 + $0x68] sm:$0xff] %v497_v12  ;;  %v475_v13 = vpop.permute.xlu1 %474 }
 0x2d2   : > { %v494_v57 = vmul.f32 %v475_v13, %v711_v14  ;;  %v495_v58 = vmul.f32 %v475_v13, %v713_v15 }
 0x2d4   : > { %510 = vst [vmem:[%s775_s11 + $0x50] sm:$0xff] %v494_v57  ;;  %511 = vst [vmem:[%s775_s11 + $0x58] sm:$0xff] %v495_v58 }
 0x2d5   : > { %v483_v8 = vpop.permute.xlu1 %482 }
 0x2d6   : > { %v498_v59 = vmul.f32 %v483_v8, %v723_v20  ;;  %v499_v9 = vmul.f32 %v483_v8, %v725_v21 }
 0x2d8   : > { %514 = vst [vmem:[%s775_s11 + $0x70] sm:$0xff] %v498_v59  ;;  %515 = vst [vmem:[%s775_s11 + $0x78] sm:$0xff] %v499_v9 }
 0x2d9 PF: > { %s13_s12 = sadd.s32 1, %s643_s12  }
 0x2da   : > { %p10_p4 = scmp.ge.s32.totalorder %s13_s12, 4  }
 0x2dc   :  { %12 = sbr.rel (!%p10_p4) target bundleno = 1 (0x1), region = 62 }

</bundles_post_ra>
